<compile_context>
chip_gen: v5e
topology: v5e:2x2
jax: 0.10.0
libtpu: 0.0.40
codegen_flags: <defaults>
</compile_context>

<pallas_src>
import jax
import jax.numpy as jnp
from jax.experimental import pallas as pl
from jax.experimental.pallas import tpu as pltpu


def _pad_up(v, m):
    return -(-v // m) * m


def _copy_kernel(x_ref, o_ref):
    # Fast path body. x_ref: (bt, f, t); o_ref: (bt, 1, f, t).  The F<->C
    # permutation is done purely by the BlockSpec index maps, so this is an
    # identity copy (inserting a unit dim before the last two dims is
    # layout-free).
    o_ref[...] = x_ref[...].reshape(o_ref.shape)


def _slab_kernel(x_ref, o_ref):
    # General path body. x_ref: (bt, f, cc, t); o_ref: (bt, cc, f*t).
    # Unrolled static loop over the frequency-group dim: each step is a direct
    # (bt, cc, t) slab copy into a static lane slice -- no transpose/reshape
    # relayout and no large live intermediate.
    f = x_ref.shape[1]
    t = x_ref.shape[3]
    for fi in range(f):
        o_ref[:, :, fi * t:(fi + 1) * t] = x_ref[:, fi, :, :]


def _vmem_budget():
    """(per-kernel working-set budget, physical VMEM capacity) in bytes."""
    cap = 64 * 1024 * 1024  # conservative default (v7x per-core VMEM)
    try:
        cap = int(getattr(pltpu.get_tpu_info(), "vmem_capacity_bytes", cap))
    except Exception:
        pass
    # ~half of physical VMEM, capped at 48 MiB: ~48 MiB on v5e/v6e (128 MiB),
    # ~32 MiB on v7x (64 MiB).
    return min(cap // 2, 48 * 1024 * 1024), cap


def to2d(x, f, c, *, max_block_bytes=None):
    """x: (bs, f*c, t) -> (bs, c, f, t), same dtype (pure data movement)."""
    bs, cf, t = x.shape
    assert cf == f * c, f"channel dim {cf} != f*c = {f * c}"

    itemsize = x.dtype.itemsize
    sub = {4: 8, 2: 16, 1: 32}.get(itemsize, 8)   # sublane tile per dtype
    budget, cap = _vmem_budget()
    if max_block_bytes is not None:
        budget = int(max_block_bytes)

    def call(kernel, grid, in_specs, out_specs, out_shape, needed_bytes):
        vmem_limit = int(min(max(cap - (8 << 20), 32 << 20),
                             max(needed_bytes + (16 << 20), 48 << 20)))
        return pl.pallas_call(
            kernel,
            out_shape=out_shape,
            grid_spec=pltpu.PrefetchScalarGridSpec(
                num_scalar_prefetch=0,
                grid=grid,
                in_specs=in_specs,
                out_specs=out_specs,
            ),
            compiler_params=pltpu.CompilerParams(
                dimension_semantics=("parallel",) * len(grid),
                vmem_limit_bytes=vmem_limit,
            ),
            cost_estimate=pl.CostEstimate(
                flops=0,
                transcendentals=0,
                bytes_accessed=2 * bs * f * c * t * itemsize,
            ),
        )

    if t % 128 == 0:
        # ---------- Fast path: permutation via BlockSpec addressing only ----
        x3 = x.reshape(bs, f, c * t)                       # free reshape
        per_b = 2 * 2 * _pad_up(f, sub) * t * itemsize     # dbl-buffered in+out
        bt = max(1, min(bs, budget // max(per_b, 1)))
        if c == 1 and bs >= 2:
            bt = min(bt, -(-bs // 2))                      # keep >= 2 grid steps
        nb = pl.cdiv(bs, bt)
        return call(
            _copy_kernel,
            grid=(nb, c),
            in_specs=[pl.BlockSpec((bt, f, t), lambda b, ci: (b, 0, ci))],
            out_specs=pl.BlockSpec((bt, 1, f, t), lambda b, ci: (b, ci, 0, 0)),
            out_shape=jax.ShapeDtypeStruct((bs, c, f, t), x.dtype),
            needed_bytes=bt * per_b,
        )(x3)

    # ---------- General path: lane-dense (bs, c, f*t) output ---------------
    x4 = x.reshape(bs, f, c, t)                            # free reshape

    def tile_bytes(bt, cc):
        in_b = bt * f * _pad_up(cc, sub) * _pad_up(t, 128) * itemsize
        out_b = bt * _pad_up(cc, sub) * _pad_up(f * t, 128) * itemsize
        return 2 * (in_b + out_b)                          # double buffered

    cc = c
    if tile_bytes(1, cc) > budget and c > sub:
        # Fallback: split channels into sublane-aligned chunks (second grid
        # axis) instead of exceeding the VMEM budget.
        cand = (c // sub) * sub
        while cand > sub and tile_bytes(1, cand) > budget:
            cand -= sub
        cc = max(sub, cand)
    ncc = pl.cdiv(c, cc)

    per_b = tile_bytes(1, cc)
    bt = max(1, min(bs, budget // max(per_b, 1)))
    if ncc == 1 and bs >= 2:
        bt = min(bt, -(-bs // 2))                          # keep >= 2 grid steps
    nb = pl.cdiv(bs, bt)

    out_flat = call(
        _slab_kernel,
        grid=(nb, ncc),
        in_specs=[pl.BlockSpec((bt, f, cc, t), lambda b, cb: (b, 0, cb, 0))],
        out_specs=pl.BlockSpec((bt, cc, f * t), lambda b, cb: (b, cb, 0)),
        out_shape=jax.ShapeDtypeStruct((bs, c, f * t), x.dtype),
        needed_bytes=tile_bytes(bt, cc),
    )(x4)
    # TODO(synk): when f*t < 128 the stores in this path are still partially
    # masked; data volume is tiny in that regime so it is left as-is.
    return out_flat.reshape(bs, c, f, t)                   # free reshape


if __name__ == "__main__":
    base_key = jax.random.PRNGKey(0)

    def run_case(idx, bs, f, c, t, dtype=jnp.float32, **kw):
        k = jax.random.fold_in(base_key, idx)
        x = jax.random.normal(k, (bs, f * c, t), dtype=dtype)
        y = jax.block_until_ready(to2d(x, f, c, **kw))
        ref = jnp.transpose(x.reshape(bs, f, c, t), (0, 2, 1, 3))
        assert y.shape == (bs, c, f, t), (y.shape, (bs, c, f, t))
        assert y.dtype == x.dtype
        assert jnp.array_equal(y, ref), f"mismatch bs={bs} f={f} c={c} t={t} {dtype}"

    # Small shapes consistent with the module (f freq groups, c channels, t frames).
    run_case(0, 2, 4, 8, 16)                                 # general path, t < 128
    run_case(1, 2, 4, 8, 128)                                # fast path, t % 128 == 0
    run_case(2, 3, 4, 8, 16)                                 # bs not divisible by batch block
    run_case(3, 2, 4, 16, 16, max_block_bytes=48 * 1024)     # forced channel-chunk fallback
    run_case(4, 2, 4, 8, 16, dtype=jnp.bfloat16)             # bf16 (sublane tile 16)
    print("KERNEL_OK")
</pallas_src>

<mosaic_0001>
module attributes {stable_mosaic.version = 11 : i64} {
  func.func @_slab_kernel(%arg0: i32, %arg1: i32, %arg2: memref<1x4x8x16xf32, #tpu.memory_space<vmem>>, %arg3: memref<1x8x64xf32, #tpu.memory_space<vmem>>) attributes {dimension_semantics = [#tpu.dimension_semantics<parallel>, #tpu.dimension_semantics<parallel>], iteration_bounds = array<i64: 2, 1>, scalar_prefetch = 0 : i64, scratch_operands = 0 : i64, tpu.core_type = #tpu.core_type<tc>, window_params = [{transform_indices = @transform_0, window_bounds = array<i64: 1, 4, 8, 16>}, {transform_indices = @transform_1, window_bounds = array<i64: 1, 8, 64>}]} {
    %c0 = arith.constant 0 : index
    %c0_0 = arith.constant 0 : index
    %c0_1 = arith.constant 0 : index
    %c0_2 = arith.constant 0 : index
    %0 = vector.load %arg2[%c0, %c0_0, %c0_1, %c0_2] : memref<1x4x8x16xf32, #tpu.memory_space<vmem>>, vector<1x1x8x16xf32>
    %1 = vector.shape_cast %0 : vector<1x1x8x16xf32> to vector<1x8x16xf32>
    %c0_3 = arith.constant 0 : index
    %c0_4 = arith.constant 0 : index
    %c0_5 = arith.constant 0 : index
    %2 = vector.load %arg3[%c0_3, %c0_4, %c0_5] : memref<1x8x64xf32, #tpu.memory_space<vmem>>, vector<1x8x16xf32>
    tpu.vector_store %arg3[%c0_3, %c0_4, %c0_5], %1 {strides = array<i32>} : memref<1x8x64xf32, #tpu.memory_space<vmem>>, vector<1x8x16xf32>,
    %c0_6 = arith.constant 0 : index
    %c1 = arith.constant 1 : index
    %c0_7 = arith.constant 0 : index
    %c0_8 = arith.constant 0 : index
    %3 = vector.load %arg2[%c0_6, %c1, %c0_7, %c0_8] : memref<1x4x8x16xf32, #tpu.memory_space<vmem>>, vector<1x1x8x16xf32>
    %4 = vector.shape_cast %3 : vector<1x1x8x16xf32> to vector<1x8x16xf32>
    %c0_9 = arith.constant 0 : index
    %c0_10 = arith.constant 0 : index
    %c16 = arith.constant 16 : index
    %5 = vector.load %arg3[%c0_9, %c0_10, %c16] : memref<1x8x64xf32, #tpu.memory_space<vmem>>, vector<1x8x16xf32>
    tpu.vector_store %arg3[%c0_9, %c0_10, %c16], %4 {strides = array<i32>} : memref<1x8x64xf32, #tpu.memory_space<vmem>>, vector<1x8x16xf32>,
    %c0_11 = arith.constant 0 : index
    %c2 = arith.constant 2 : index
    %c0_12 = arith.constant 0 : index
    %c0_13 = arith.constant 0 : index
    %6 = vector.load %arg2[%c0_11, %c2, %c0_12, %c0_13] : memref<1x4x8x16xf32, #tpu.memory_space<vmem>>, vector<1x1x8x16xf32>
    %7 = vector.shape_cast %6 : vector<1x1x8x16xf32> to vector<1x8x16xf32>
    %c0_14 = arith.constant 0 : index
    %c0_15 = arith.constant 0 : index
    %c32 = arith.constant 32 : index
    %8 = vector.load %arg3[%c0_14, %c0_15, %c32] : memref<1x8x64xf32, #tpu.memory_space<vmem>>, vector<1x8x16xf32>
    tpu.vector_store %arg3[%c0_14, %c0_15, %c32], %7 {strides = array<i32>} : memref<1x8x64xf32, #tpu.memory_space<vmem>>, vector<1x8x16xf32>,
    %c0_16 = arith.constant 0 : index
    %c3 = arith.constant 3 : index
    %c0_17 = arith.constant 0 : index
    %c0_18 = arith.constant 0 : index
    %9 = vector.load %arg2[%c0_16, %c3, %c0_17, %c0_18] : memref<1x4x8x16xf32, #tpu.memory_space<vmem>>, vector<1x1x8x16xf32>
    %10 = vector.shape_cast %9 : vector<1x1x8x16xf32> to vector<1x8x16xf32>
    %c0_19 = arith.constant 0 : index
    %c0_20 = arith.constant 0 : index
    %c48 = arith.constant 48 : index
    %11 = vector.load %arg3[%c0_19, %c0_20, %c48] : memref<1x8x64xf32, #tpu.memory_space<vmem>>, vector<1x8x16xf32>
    tpu.vector_store %arg3[%c0_19, %c0_20, %c48], %10 {strides = array<i32>} : memref<1x8x64xf32, #tpu.memory_space<vmem>>, vector<1x8x16xf32>,
    return
  }
  func.func @transform_0(%arg0: i32, %arg1: i32) -> (i32, i32, i32, i32) {
    %c0_i32 = arith.constant 0 : i32
    %c0_i32_0 = arith.constant 0 : i32
    %c0_i32_1 = arith.constant 0 : i32
    return %arg0, %c0_i32, %arg1, %c0_i32_0 : i32, i32, i32, i32
  }
  func.func @transform_1(%arg0: i32, %arg1: i32) -> (i32, i32, i32) {
    %c0_i32 = arith.constant 0 : i32
    %c0_i32_0 = arith.constant 0 : i32
    return %arg0, %arg1, %c0_i32 : i32, i32, i32
  }
}

</mosaic_0001>

<bundles_post_ra>
// kernel: tpu_custom_call.1
= control target key start
LH: loop header
LB: loop body
LE: loop exit
PB: predicated region body
PF: predicated region fallthrough
CT: control target
= control target key end

     0   :  { %6 = vsyncpa [#allocation3], 0  ;;  %s614_s0 = inlined_call_operand.hbm [shape: f32[2,4,8,16], index: 0, kind: input, shape index: {}]   ;;  %s615_s1 = inlined_call_operand.hbm [shape: f32[2,8,64], index: 1, kind: output, shape index: {}]  }
   0x1   :  { %8 = vsyncpa [#allocation3 + $0x1], 0 }
   0x2   :  { %9 = vsyncpa [#allocation4], 0 }
   0x3   :  { %11 = vsyncpa [#allocation4 + $0x1], 0  ;;  %s493_s6 = smov 0   ;;  %s495_s7 = smov 0  }
   0x4   :  { %s497_s8 = smov 0   ;;  %s499_s9 = smov 0  }
   0x5   :  { %s501_s10 = smov 0   ;;  %s503_s11 = smov 0  }
   0x6 LB: > { %s279_s12 = sadd.s32 4294967295, %s476_s11   ;;  %s280_s13 = sadd.s32 4294967294, %s476_s11   ;;  %s476_s11 = sphi %s503_s11, %s17_s11   ;;  %s472_s10 = sphi %s501_s10, %s624_s10   ;;  %s468_s9 = sphi %s499_s9, %s623_s9   ;;  %s464_s8 = sphi %s497_s8, %s622_s8   ;;  %s460_s7 = sphi %s495_s7, %s621_s7   ;;  %s456_s6 = sphi %s493_s6, %s620_s6  }
   0x7   : > { %s29_s14 = sadd.s32 1, %s472_s10  ;;  %s38_s15 = sadd.s32 1, %s464_s8 }
   0x8   : > { %p31_p0 = scmp.ge.s32.totalorder %s29_s14, 2  ;;  %p45_p1 = scmp.ne.s32.totalorder %s464_s8, %s460_s7 }
   0x9   : > { %p46_p2 = scmp.eq.s32.totalorder %s476_s11, 0  ;;  %p51_p3 = scmp.ne.s32.totalorder %s460_s7, %s456_s6 }
   0xa   : > { %s626_s14 = smov (%p31_p0, %s29_s14), 0  ;;  %p52_p5 = scmp.eq.s32.totalorder %s279_s12, 0 }
   0xb   : > { %p534_p4 = por %p46_p2, %p45_p1  ;;  %s33_s17 = ssub.s32 %s472_s10, %s626_s14 }
   0xc   : > { %p77_p6 = scmp.eq.s32.totalorder %s279_s12, 1  ;;  %p36_p7 = scmp.eq.s32.totalorder %s33_s17, 0 }
   0xd   : > { %p540_p8 = por %p52_p5, %p51_p3  ;;  %p83_p10 = scmp.eq.s32.totalorder %s280_s13, 1 }
   0xe   : > { %p544_p9 = por %p77_p6, %p45_p1  ;;  %p282_p12 = scmp.ge.s32.totalorder %s476_s11, 2 }
   0xf   : > { %s549_s20 = scalar_select %p36_p7, %s464_s8, %s38_s15  }
  0x10   : > { %p551_p11 = por %p83_p10, %p51_p3  ;;  %p309_p13 = scmp.lt.s32.totalorder %s476_s11, 2 }
  0x11   : > { %s103_s22 = sand.u32 1, %s464_s8   ;;  %s296_s24 = sshll.u32 %s472_s10, 5 }
  0x12   : > { %s283_s23 = sshll.u32 %s103_s22, 5  ;;  %s113_s27 = scalar_lea.hbm %s614_s0, %s296_s24 }
  0x13   : > { %s107_s28 = scalar_lea.vmem [#allocation2], %s283_s23  ;;  %s114_s30 = sshll.u32 %s113_s27, 4  ;;  %s115_s30 = int_to_ptr.hbm [resolvable:$true] %s114_s30 }
  0x14   : > { %s116_s29 = sshll.u32 %s107_s28, 4  ;;  %p302_p0 = pnand %p309_p13, %p534_p4  ;;  %s117_s29 = int_to_ptr.vmem [resolvable:$true] %s116_s29 }
  0x15   : > { %p286_p1 = scmp.ge.s32.totalorder %s476_s11, 1  ;;  %s104_s2 = scalar_lea.sflag [#allocation3], %s103_s22 }
  0x16   : > { %s478_s3 = smov 128   ;;  %s479_s4 = smov 8  }
  0x17   : > { %304 = dma.hbm_to_vmem [thread:$0]  (!%p302_p0), %s115_s30, 512, %s117_s29, %s104_s2, %s478_s3, %s478_s3, %s479_s4  }
  0x18   : > { %p124_p2 = scmp.lt.s32.totalorder %s476_s11, 3 }
  0x1a   : > { %p125_p3 = pnand %p286_p1, %p124_p2 }
  0x1b   : > { %s567_s5 = sand.u32 (!%p125_p3), 1, %s460_s7  }
  0x1c   : > { %128 = sbr.rel (%p125_p3) target bundleno = 162 (0xa2), region = 24  ;;  %s287_s12 = sshll.u32 (!%p125_p3), %s567_s5, 5 }
  0x1d   : > { %s131_s13 = scalar_lea.sflag (!%p125_p3), [#allocation3], %s567_s5  ;;  %s134_s15 = scalar_lea.vmem (!%p125_p3), [#allocation2], %s287_s12 }
  0x21   : > { %447 = dma.done.wait (%p540_p8), %s131_s13, 512  }
  0x22   : > { %449 = vsyncadd (%p540_p8), %s131_s13, 4294966784  ;;  %v289_v0 = vld [vmem:[%s134_s15 + $0x8] sm:$0xff]  ;;  %v291_v1 = vld [vmem:[%s134_s15 + $0x18] sm:$0xff]  ;;  %s480_s16 = smov 16   ;;  %s481_s17 = smov 48   ;;  %vm155_vm0 = vcmask 130048  }
  0x23   : > { %160 = vrot.lane.b32.xlu0 %v289_v0, %s480_s16  ;;  %176 = vrot.lane.b32.xlu1 %v291_v1, %s481_s17  ;;  %v290_v2 = vld [vmem:[%s134_s15 + $0x10] sm:$0xff]  ;;  %s482_s22 = smov 32   ;;  %s288_s23 = sshll.u32 %s567_s5, 3  ;;  %v154_v3 = vld [vmem:[%s134_s15] sm:$0xff]  ;;  %vm163_vm1 = vcmask 261248   ;;  %vm171_vm2 = vcmask 392448  }
  0x24   : > { %s153_s24 = scalar_lea.vmem [#allocation5], %s288_s23  ;;  %s293_s18 = sshll.u32 %s468_s9, 3  ;;  %vm179_vm3 = vcmask 523648  }
  0x25   : > { %156 = vst.msk [vmem:[%s153_s24] sm:$0xff] %vm155_vm0, %v154_v3  ;;  %s193_s27 = scalar_lea.hbm %s615_s1, %s293_s18  ;;  %s195_s28 = sshll.u32 %s153_s24, 4  ;;  %s196_s28 = int_to_ptr.vmem [resolvable:$true] %s195_s28 }
  0x26   : > { %s197_s29 = sshll.u32 %s193_s27, 4  ;;  %s182_s30 = scalar_lea.sflag [#allocation4], %s567_s5  ;;  %s198_s29 = int_to_ptr.hbm [resolvable:$true] %s197_s29 }
  0x27   : > { %s408_s2 = sshra.s32 %s198_s29, 4  ;;  %s414_s12 = scalar_lea.hbm %s615_s1, 16  ;;  %s409_s2 = int_to_ptr.hbm [resolvable:$true] %s408_s2 }
  0x28   : > { %s410_s9 = scalar_lea.hbm %s409_s2, 8  ;;  %p415_p7 = scmp.lt.s32.totalorder %s409_s2, %s615_s1 }
  0x29   : > { %p411_p4 = scmp.ne.s32.totalorder %s409_s2, %s410_s9  ;;  %p416_p8 = scmp.lt.s32.totalorder %s414_s12, %s410_s9 }
  0x2b   : > { %168 = vrot.lane.b32.xlu0 %v290_v2, %s482_s22  ;;  %p412_p5 = pnand %p411_p4, %p544_p9  ;;  %p417_p10 = por %p416_p8, %p415_p7 }
  0x2d   : > { %p413_p6 = pneg %p412_p5 }
  0x2f   : > { %p418_p13 = pnand %p417_p10, %p413_p6 }
  0x95   : > { %v161_v4 = vpop.permute.xlu0 %160  ;;  %v177_v5 = vpop.permute.xlu1 %176 }
  0x96   : > { %164 = vst.msk [vmem:[%s153_s24] sm:$0xff] %vm163_vm1, %v161_v4 }
  0x9d   : > { %v169_v6 = vpop.permute.xlu0 %168 }
  0x9e   : > { %172 = vst.msk [vmem:[%s153_s24] sm:$0xff] %vm171_vm2, %v169_v6 }
  0x9f   : > { %180 = vst.msk [vmem:[%s153_s24] sm:$0xff] %vm179_vm3, %v177_v5 }
  0xa0   : > { %421 = shalt.err (!%p418_p13)
}
  0xa1   : > { %299 = dma.vmem_to_hbm [thread:$0]  (%p544_p9), %s196_s28, 128, %s198_s29, %s182_s30  }
  0xa2 PF: > { %s209_s5 = sand.u32 1, %s456_s6   ;;  %p306_p0 = pnand %p282_p12, %p551_p11 }
  0xa3   : > { %s210_s16 = scalar_lea.sflag [#allocation4], %s209_s5 }
  0xa4   : > { %p307_p1 = pneg %p306_p0 }
  0xa6   : > { %451 = dma.done.wait (%p307_p1), %s210_s16, 128  }
  0xa7   : > { %453 = vsyncadd (%p307_p1), %s210_s16, 4294967168  ;;  %s17_s11 = sadd.s32 1, %s476_s11   ;;  %s620_s6 = smov %s460_s7 }
  0xa8   : > { %p14_p2 = scmp.ge.s32.totalorder %s17_s11, 4   ;;  %s621_s7 = smov %s464_s8 }
  0xa9   : > { %s622_s8 = smov %s549_s20  ;;  %s623_s9 = smov %s472_s10 }
  0xaa   : > { %s624_s10 = smov %s626_s14  ;;  %16 = sbr.rel (!%p14_p2) target bundleno = 6 (0x6), region = 72 }
  0xaf   :  { %216 = vsyncpa [#allocation3], 1 }
  0xb0   :  { %218 = vsyncpa [#allocation3 + $0x1], 1 }
  0xb1   :  { %219 = vsyncpa [#allocation4], 1 }
  0xb2   :  { %221 = vsyncpa [#allocation4 + $0x1], 1 }

</bundles_post_ra>
